<compile_context>
chip_gen: v6e
topology: v6e:2x2x1
jax: 0.10.0
libtpu: 0.0.40
codegen_flags: <defaults>
</compile_context>

<pallas_src>
import jax
import jax.numpy as jnp
from jax.experimental import pallas as pl
from jax.experimental.pallas import tpu as pltpu

_LANE = 128
_SUBLANE = 8
# Expansion-embeddings bytes per grid step (before double buffering).
_TILE_BYTES = 2 * 1024 * 1024


def _identity_scoring_kernel(exp_ref, tgt_ref, out_ref):
    # exp_ref: (TB, J, L), tgt_ref: (TB, L), out_ref: (TB, Jp), Jp % 128 == 0 or Jp == J.
    e = exp_ref[...].astype(jnp.float32)
    t = tgt_ref[...].astype(jnp.float32)
    # out[b, j] = sum_l e[b, j, l] * t[b, l]   (f32 accumulation over the lane axis)
    scores = jnp.sum(e * t[:, None, :], axis=-1)          # (TB, J) float32
    tb, j = scores.shape
    jp = out_ref.shape[-1]
    if jp != j:  # static (trace-time) branch: pad to a lane-dense store width
        scores = jnp.concatenate(
            [scores, jnp.zeros((tb, jp - j), jnp.float32)], axis=-1)
    out_ref[...] = scores.astype(out_ref.dtype)


def _choose_batch_tile(batch, row_bytes):
    """Rows per grid step: ~_TILE_BYTES of expansion data, sublane-aligned if possible."""
    tb = max(1, min(batch, _TILE_BYTES // max(row_bytes, 1)))
    if tb == batch and batch >= 2 * _SUBLANE:
        # Keep >= 2 grid steps so the parallel batch axis can shard across both
        # TensorCores on v7x; near-neutral on single-TC v5e/v6e.
        tb = max(_SUBLANE, ((batch // 2) // _SUBLANE) * _SUBLANE)
    if _SUBLANE <= tb < batch:
        tb = (tb // _SUBLANE) * _SUBLANE
    return tb


def identity_scoring(target, expansion_embeddings):
    """Pallas equivalent of torch.einsum('ijl,il->ij', expansion_embeddings, target)."""
    B, J, L = expansion_embeddings.shape
    assert target.shape == (B, L), (target.shape, expansion_embeddings.shape)
    out_dtype = jnp.result_type(target.dtype, expansion_embeddings.dtype)

    row_bytes = J * L * expansion_embeddings.dtype.itemsize
    tb = _choose_batch_tile(B, row_bytes)

    # Lane-dense output width (multiple of 128); sliced back to J in the wrapper.
    jp = pl.cdiv(J, _LANE) * _LANE

    grid = (pl.cdiv(B, tb),)

    out = pl.pallas_call(
        _identity_scoring_kernel,
        out_shape=jax.ShapeDtypeStruct((B, jp), out_dtype),
        grid_spec=pltpu.PrefetchScalarGridSpec(
            num_scalar_prefetch=0,
            grid=grid,
            in_specs=[
                pl.BlockSpec((tb, J, L), lambda b: (b, 0, 0)),
                pl.BlockSpec((tb, L), lambda b: (b, 0)),
            ],
            out_specs=pl.BlockSpec((tb, jp), lambda b: (b, 0)),
        ),
        compiler_params=pltpu.CompilerParams(
            dimension_semantics=("parallel",),
        ),
    )(expansion_embeddings, target)

    return out[:, :J]


if __name__ == "__main__":
    key = jax.random.PRNGKey(0)
    k1, k2, k3, k4 = jax.random.split(key, 4)

    # Small shapes implied by the module: batch=2, candidates=8, hidden=32.
    B, J, L = 2, 8, 32
    expansion_embeddings = jax.random.normal(k1, (B, J, L), dtype=jnp.float32)
    target = jax.random.normal(k2, (B, L), dtype=jnp.float32)

    out = identity_scoring(target, expansion_embeddings)
    out = jax.block_until_ready(out)

    ref = jnp.einsum("ijl,il->ij", expansion_embeddings, target)
    assert out.shape == (B, J)
    assert jnp.allclose(out, ref, atol=1e-5, rtol=1e-5)

    # Exercise the multi-block, sublane-aligned tiling path as well.
    B2, J2, L2 = 64, 8, 32
    exp2 = jax.random.normal(k3, (B2, J2, L2), dtype=jnp.float32)
    tgt2 = jax.random.normal(k4, (B2, L2), dtype=jnp.float32)
    out2 = jax.block_until_ready(identity_scoring(tgt2, exp2))
    ref2 = jnp.einsum("ijl,il->ij", exp2, tgt2)
    assert out2.shape == (B2, J2)
    assert jnp.allclose(out2, ref2, atol=1e-5, rtol=1e-5)

    print("KERNEL_OK")
</pallas_src>

<mosaic_0001>
module attributes {stable_mosaic.version = 11 : i64} {
  func.func @_identity_scoring_kernel(%arg0: i32, %arg1: memref<2x8x32xf32, #tpu.memory_space<vmem>>, %arg2: memref<2x32xf32, #tpu.memory_space<vmem>>, %arg3: memref<2x128xf32, #tpu.memory_space<vmem>>) attributes {dimension_semantics = [#tpu.dimension_semantics<parallel>], iteration_bounds = array<i64: 1>, scalar_prefetch = 0 : i64, scratch_operands = 0 : i64, tpu.core_type = #tpu.core_type<tc>, window_params = [{transform_indices = @transform_0, window_bounds = array<i64: 2, 8, 32>}, {transform_indices = @transform_1, window_bounds = array<i64: 2, 32>}, {transform_indices = @transform_2, window_bounds = array<i64: 2, 128>}]} {
    %c0 = arith.constant 0 : index
    %c0_0 = arith.constant 0 : index
    %c0_1 = arith.constant 0 : index
    %0 = vector.load %arg1[%c0, %c0_0, %c0_1] : memref<2x8x32xf32, #tpu.memory_space<vmem>>, vector<2x8x32xf32>
    %c0_2 = arith.constant 0 : index
    %c0_3 = arith.constant 0 : index
    %1 = vector.load %arg2[%c0_2, %c0_3] : memref<2x32xf32, #tpu.memory_space<vmem>>, vector<2x32xf32>
    %2 = vector.shape_cast %1 : vector<2x32xf32> to vector<2x1x32xf32>
    %3 = vector.broadcast %2 : vector<2x1x32xf32> to vector<2x8x32xf32>
    %4 = arith.mulf %0, %3 : vector<2x8x32xf32>
    %cst = arith.constant dense<0.000000e+00> : vector<2x8xf32>
    %5 = vector.multi_reduction <add>, %4, %cst [2] : vector<2x8x32xf32> to vector<2x8xf32>
    %cst_4 = arith.constant 0.000000e+00 : f32
    %6 = vector.broadcast %cst_4 : f32 to vector<2x120xf32>
    %7 = tpu.concatenate %5, %6 in 1 : vector<2x8xf32>, vector<2x120xf32> -> vector<2x128xf32>
    %c0_5 = arith.constant 0 : index
    %c0_6 = arith.constant 0 : index
    %8 = vector.load %arg3[%c0_5, %c0_6] : memref<2x128xf32, #tpu.memory_space<vmem>>, vector<2x128xf32>
    tpu.vector_store %arg3[%c0_5, %c0_6], %7 {strides = array<i32>} : memref<2x128xf32, #tpu.memory_space<vmem>>, vector<2x128xf32>,
    return
  }
  func.func @transform_0(%arg0: i32) -> (i32, i32, i32) {
    %c0_i32 = arith.constant 0 : i32
    %c0_i32_0 = arith.constant 0 : i32
    %c0_i32_1 = arith.constant 0 : i32
    return %arg0, %c0_i32, %c0_i32_0 : i32, i32, i32
  }
  func.func @transform_1(%arg0: i32) -> (i32, i32) {
    %c0_i32 = arith.constant 0 : i32
    %c0_i32_0 = arith.constant 0 : i32
    return %arg0, %c0_i32 : i32, i32
  }
  func.func @transform_2(%arg0: i32) -> (i32, i32) {
    %c0_i32 = arith.constant 0 : i32
    %c0_i32_0 = arith.constant 0 : i32
    return %arg0, %c0_i32 : i32, i32
  }
}

</mosaic_0001>

<bundles_post_ra>
// kernel: tpu_custom_call.1
= control target key start
LH: loop header
LB: loop body
LE: loop exit
PB: predicated region body
PF: predicated region fallthrough
CT: control target
= control target key end

     0   :  { %7 = vsyncpa [#allocation3], 0  ;;  %s220_s0 = inlined_call_operand.hbm [shape: f32[2,8,32], index: 0, kind: input, shape index: {}]   ;;  %s221_s1 = inlined_call_operand.hbm [shape: f32[2,32], index: 1, kind: input, shape index: {}]   ;;  %s222_s2 = inlined_call_operand.hbm [shape: f32[2,128], index: 2, kind: output, shape index: {}]  }
   0x1   :  { %8 = vsyncpa [#allocation6], 0 }
   0x2   :  { %9 = vsyncpa [#allocation4], 0  ;;  %s190_s9 = smov [#allocation2]  }
   0x3   :  { %s15_s10 = sshll.u32 %s190_s9, 4  ;;  %s16_s10 = int_to_ptr.vmem [resolvable:$true] %s15_s10 }
   0x4   :  { %s132_s11 = scalar_lea.vmem %s16_s10, 256  ;;  %p137_p1 = scmp.lt.s32.totalorder %s16_s10, %s16_s10 }
   0x5   :  { %p133_p0 = scmp.ne.s32.totalorder %s16_s10, %s132_s11  ;;  %p138_p2 = scmp.lt.s32.totalorder %s132_s11, %s132_s11 }
   0x7   :  { %p139_p3 = por %p138_p2, %p137_p1 }
   0x9   :  { %p140_p4 = pnand %p139_p3, %p133_p0 }
   0xb   :  { %143 = shalt.err (!%p140_p4)
}
   0xc   :  { %s191_s12 = smov 128   ;;  %s192_s13 = smov 8  }
   0xd   :  { %21 = dma.hbm_to_vmem [thread:$0]  %s220_s0, 256, %s16_s10, [#allocation3], %s191_s12, %s191_s12, %s192_s13  }
   0xe   :  { %s193_s16 = smov [#allocation5]  }
   0xf   :  { %s28_s17 = sshll.u32 %s193_s16, 4  ;;  %s29_s17 = int_to_ptr.vmem [resolvable:$true] %s28_s17 }
  0x10   :  { %s152_s18 = scalar_lea.vmem %s29_s17, 32  ;;  %p157_p6 = scmp.lt.s32.totalorder %s29_s17, %s29_s17 }
  0x11   :  { %p153_p5 = scmp.ne.s32.totalorder %s29_s17, %s152_s18  ;;  %p158_p7 = scmp.lt.s32.totalorder %s152_s18, %s152_s18 }
  0x13   :  { %p159_p8 = por %p158_p7, %p157_p6 }
  0x15   :  { %p160_p9 = pnand %p159_p8, %p153_p5 }
  0x17   :  { %163 = shalt.err (!%p160_p9)
}
  0x18   :  { %31 = dma.hbm_to_vmem [thread:$0]  %s221_s1, 32, %s29_s17, [#allocation6]  }
  0x19   :  { %184 = dma.done.wait [#allocation3], 256  }
  0x1a   :  { %185 = vsyncadd [#allocation3], 4294967040 }
  0x1b   :  { %186 = dma.done.wait [#allocation6], 32  }
  0x1c   :  { %187 = vsyncadd [#allocation6], 4294967264  ;;  %v53_v0 = vlaneseq  ;;  %v194_v1 = vmov 1966171168   ;;  %v38_v12 = vld [vmem:[#allocation2] sm:$0xff]  ;;  %vm76_vm0 = vcmask 261120  }
  0x1d   :  { %v51_v2 = vunpack.c.l.s4 %v194_v1  ;;  %v117_v9 = vld.sshfl [vmem:[#allocation5] sm:$0x11 pattern:$0x75316420]  ;;  %v39_v15 = vld [vmem:[#allocation2 + $0x8] sm:$0xff]  ;;  %vm95_vm1 = vcmask 1041409  }
  0x1e   :  { %v54_v3 = vshrl.u32 %v53_v0, 7  ;;  %v86_v4 = vand.u32 127, %v53_v0  ;;  %v49_v10 = vcombine.high %v117_v9, %v117_v9  ;;  %s195_s0 = smov [#allocation7]   ;;  %vm98_vm2 = vcmask 64512  }
  0x1f   :  { %v52_v5 = vunpack.c.0.s8 %v51_v2  ;;  %s107_s1 = sshll.u32 %s195_s0, 4  ;;  %s108_s1 = int_to_ptr.vmem [resolvable:$true] %s107_s1 }
  0x20   :  { %v89_v6 = vsub.s32 %v86_v4, %v54_v3  ;;  %v66_v8 = vsub.s32 0, %v54_v3  ;;  %s164_s21 = scalar_lea.vmem %s108_s1, 32  ;;  %p169_p11 = scmp.lt.s32.totalorder %s108_s1, %s108_s1 }
  0x21   :  { %v55_v7 = vsub.s32 %v52_v5, %v54_v3  ;;  %p165_p10 = scmp.ne.s32.totalorder %s108_s1, %s164_s21  ;;  %p170_p12 = scmp.lt.s32.totalorder %s164_s21, %s164_s21 }
  0x23   :  { %v56_v11 = vrot.slane %v117_v9, %v55_v7  ;;  %v63_v14 = vrot.slane %v49_v10, %v55_v7  ;;  %p171_p13 = por %p170_p12, %p169_p11 }
  0x25   :  { %v67_v13 = vrot.slane %v56_v11, %v66_v8  ;;  %v71_v17 = vrot.slane %v63_v14, %v66_v8  ;;  %p172_p0 = pnand %p171_p13, %p165_p10 }
  0x27   :  { %v74_v16 = vmul.f32 %v67_v13, %v38_v12  ;;  %v75_v19 = vmul.f32 %v71_v17, %v39_v15 }
  0x29   :  { %v77_v18 = vsel %vm76_vm0, %v74_v16, 0.0  ;;  %v80_v20 = vsel %vm76_vm0, %v75_v19, 0.0 }
  0x2a   :  { %78 = vadd.xlane.f32.xlu0 %v77_v18 }
  0x2e   :  { %81 = vadd.xlane.f32.xlu0 %v80_v20 }
  0xb3   :  { %v79_v21 = vpop.xlane.xlu0 %78 }
  0xb4   :  { %v90_v23 = vrot.slane %v79_v21, %v89_v6 }
  0xb7   :  { %v82_v22 = vpop.xlane.xlu0 %81 }
  0xb8   :  { %v94_v24 = vrot.slane %v82_v22, %v89_v6 }
  0xba   :  { %v96_v25 = vsel %vm95_vm1, %v94_v24, %v90_v23 }
  0xbb   :  { %v99_v26 = vsel %vm98_vm2, %v96_v25, 0.0 }
  0xbc   :  { %100 = vst [vmem:[#allocation7] sm:$0x3] %v99_v26 }
  0xbd   :  { %175 = shalt.err (!%p172_p0)
}
  0xbe   :  { %110 = dma.vmem_to_hbm [thread:$0]  %s108_s1, 32, %s222_s2, [#allocation4]  }
  0xbf   :  { %188 = dma.done.wait [#allocation4], 32  }
  0xc0   :  { %189 = vsyncadd [#allocation4], 4294967264 }
  0xc1   :  { %114 = vsyncpa [#allocation3], 1 }
  0xc2   :  { %115 = vsyncpa [#allocation6], 1 }
  0xc3   :  { %116 = vsyncpa [#allocation4], 1 }

</bundles_post_ra>
